<compile_context>
chip_gen: v5e
topology: v5e:2x2
jax: 0.10.0
libtpu: 0.0.40
codegen_flags: <defaults>
</compile_context>

<pallas_src>
import functools

import jax
import jax.numpy as jnp
from jax.experimental import pallas as pl
from jax.experimental.pallas import tpu as pltpu


_VMEM_BUDGET = 24 << 20      # per-pass pipeline-buffer budget (conservative)


def _round_up(v, m):
    return ((v + m - 1) // m) * m


def _pick_lane_tile(total, budget_bytes, bytes_per_lane, cap):
    """Largest multiple-of-128 lane tile dividing `total` (a multiple of 128)
    whose pipeline buffers fit `budget_bytes`, capped at `cap`."""
    max_lanes = budget_bytes // max(bytes_per_lane, 1)
    t = min(cap, total, (max_lanes // 128) * 128)
    t = max(t, 128)
    while total % t != 0:
        t -= 128
    return t


def _pick_sublane_tile(total, budget_bytes, bytes_per_row, mult):
    """Largest multiple-of-`mult` sublane tile dividing `total` within budget;
    falls back to the full dim when `total` is not a multiple of `mult`."""
    if total % mult != 0:
        return total
    max_rows = budget_bytes // max(bytes_per_row, 1)
    t = min(total, (max_rows // mult) * mult)
    t = max(t, mult)
    while total % t != 0:
        t -= mult
    return t


def _fold_bn(w, gamma, beta, rmean, rvar, eps):
    """Fold eval-mode BatchNorm into the 1x1 conv weight + per-channel shift."""
    scale = gamma / jnp.sqrt(rvar + eps)          # (Cout,)
    w_scaled = w * scale[:, None]                 # (Cout, Cin)
    shift = beta - rmean * scale                  # (Cout,)
    return w_scaled, shift.reshape(-1, 1)         # shift as (Cout, 1)


# ---------------------------------------------------------------------------
# Pass 1: fused mean-pool + (BN-folded) 1x1 conv + ReLU for both branches.
# Grid: (N, W_pad // TW); the W axis is the reduction axis for the vertical
# branch, so it stays innermost and "arbitrary".
# ---------------------------------------------------------------------------
def _pool_project_kernel(x_ref, whf_ref, sh_ref, wvf_ref, sv_ref,
                         hf_ref, vf_ref, colsum_ref, *, fold_h, valu_acc):
    wi = pl.program_id(1)
    x = x_ref[0].astype(jnp.float32)              # (Cin, H, TW), f32 math

    cin, h, tw = x.shape

    # ---- horizontal branch: 1/H (and BN scale) folded into the weight ----
    if fold_h:
        # Fold the H-reduction into the MXU contraction: K = Cin*H.
        zh = jnp.dot(whf_ref[...], x.reshape(cin * h, tw),
                     preferred_element_type=jnp.float32)      # (Cout, TW)
    else:
        zh = jnp.dot(whf_ref[...], jnp.sum(x, axis=1),
                     preferred_element_type=jnp.float32)      # (Cout, TW)
    hf_ref[0] = jnp.maximum(zh + sh_ref[...], 0.0).astype(hf_ref.dtype)

    # ---- vertical branch: accumulate column sums across W tiles ----
    @pl.when(wi == 0)
    def _():
        colsum_ref[...] = jnp.zeros_like(colsum_ref)

    if valu_acc:
        # Pure VALU accumulation into a 128-lane scratch; no per-tile XLU.
        acc = colsum_ref[...]                                  # (Cin, H, 128)
        for t in range(tw // 128):
            acc = acc + x[:, :, t * 128:(t + 1) * 128]
        colsum_ref[...] = acc
    else:
        colsum_ref[...] += jnp.sum(x, axis=2)                  # (Cin, H)

    @pl.when(wi == pl.num_programs(1) - 1)
    def _():
        if valu_acc:
            col = jnp.sum(colsum_ref[...], axis=2)             # one lane reduce / n
        else:
            col = colsum_ref[...]
        zv = jnp.dot(wvf_ref[...], col,                        # 1/W folded in wvf
                     preferred_element_type=jnp.float32)       # (Cout, H)
        vf_ref[0] = jnp.maximum(zv + sv_ref[...], 0.0).astype(vf_ref.dtype)


# ---------------------------------------------------------------------------
# Pass 2: broadcast add, lane-dense output writeback (all axes parallel).
# Grid: (N, H // TH, W_pad // TW).
# ---------------------------------------------------------------------------
def _broadcast_add_kernel(hf_ref, vf_ref, o_ref):
    # hf block (1, Cout, 1, TW), vf block (1, Cout, TH, 1) -> (Cout, TH, TW)
    o_ref[0] = (vf_ref[0] + hf_ref[0]).astype(o_ref.dtype)


def erp_pooling_forward(x, horizontal_params, vertical_params, eps=1e-5):
    """x: (N, Cin, H, W) NCHW.  Each params tuple = (conv_w, gamma, beta, mean, var)."""
    N, Cin, H, W = x.shape
    out_dtype = x.dtype
    wh, gh, bh, rmh, rvh = horizontal_params
    wv, gv, bv, rmv, rvv = vertical_params
    Cout = wh.shape[0]

    wh_s, shift_h = _fold_bn(wh, gh, bh, rmh, rvh, eps)
    wv_s, shift_v = _fold_bn(wv, gv, bv, rmv, rvv, eps)

    # Fold 1/H into the horizontal weight; fold the H-reduction into the MXU
    # (K = Cin*H) when the expanded weight stays small and H is 8-aligned.
    fold_h = (H % 8 == 0) and (Cout * Cin * H * 4 <= (2 << 20))
    whf = jnp.repeat(wh_s / H, H, axis=1) if fold_h else (wh_s / H)
    wvf = wv_s / W                                   # 1/W folded (true W, not padded)

    # Pad W to a multiple of 128: all stores become unmasked lane-dense vst.
    w_pad = _round_up(W, 128)
    if w_pad != W:
        x = jnp.pad(x, ((0, 0), (0, 0), (0, 0), (0, w_pad - W)))

    xsize = x.dtype.itemsize
    osize = jnp.dtype(out_dtype).itemsize
    cout_p = _round_up(Cout, 8)
    h_sub = _round_up(H, 16 if xsize < 4 else 8)

    # ------------------- pass 1 tile / VMEM sizing -------------------
    valu_acc = Cin * h_sub * 128 * 4 <= (8 << 20)
    colsum_shape = (Cin, H, 128) if valu_acc else (Cin, H)
    colsum_bytes = (Cin * h_sub * 128 * 4 if valu_acc
                    else Cin * _round_up(H, 128) * 4)
    kh = whf.shape[1]
    fixed1 = (colsum_bytes
              + 2 * cout_p * _round_up(kh, 128) * 4      # whf double buffer
              + 2 * cout_p * _round_up(Cin, 128) * 4     # wvf double buffer
              + 4 * cout_p * 128 * 4                     # shift buffers
              + 2 * cout_p * _round_up(H, 128) * 4)      # v_feat out buffer
    per_lane1 = 2 * Cin * h_sub * xsize + 2 * cout_p * 4  # x + h_feat buffers
    tw1 = _pick_lane_tile(w_pad, _VMEM_BUDGET - fixed1, per_lane1, cap=1024)
    est1 = fixed1 + per_lane1 * tw1 + (2 << 20)
    vmem1 = int(min(max(est1 * 3 // 2, 16 << 20), 40 << 20))

    h_feat, v_feat = pl.pallas_call(
        functools.partial(_pool_project_kernel, fold_h=fold_h, valu_acc=valu_acc),
        out_shape=(jax.ShapeDtypeStruct((N, Cout, w_pad), jnp.float32),
                   jax.ShapeDtypeStruct((N, Cout, H), jnp.float32)),
        grid_spec=pltpu.PrefetchScalarGridSpec(
            num_scalar_prefetch=0,
            grid=(N, w_pad // tw1),
            in_specs=[
                pl.BlockSpec((1, Cin, H, tw1), lambda n, wi: (n, 0, 0, wi)),
                pl.BlockSpec(whf.shape, lambda n, wi: (0, 0)),
                pl.BlockSpec((Cout, 1), lambda n, wi: (0, 0)),
                pl.BlockSpec((Cout, Cin), lambda n, wi: (0, 0)),
                pl.BlockSpec((Cout, 1), lambda n, wi: (0, 0)),
            ],
            out_specs=[
                pl.BlockSpec((1, Cout, tw1), lambda n, wi: (n, 0, wi)),
                pl.BlockSpec((1, Cout, H), lambda n, wi: (n, 0, 0)),
            ],
            scratch_shapes=[pltpu.VMEM(colsum_shape, jnp.float32)],
        ),
        compiler_params=pltpu.CompilerParams(
            dimension_semantics=("parallel", "arbitrary"),
            vmem_limit_bytes=vmem1),
    )(x, whf, shift_h, wvf, shift_v)

    # Tiny metadata reshapes of the pooled vectors only (no big-tensor moves).
    hf4 = h_feat.reshape(N, Cout, 1, w_pad)
    vf4 = v_feat.reshape(N, Cout, H, 1)

    # ------------------- pass 2 tile / VMEM sizing -------------------
    mult_h = 16 if osize < 4 else 8
    per_lane2 = 2 * Cout * _round_up(min(H, 256), mult_h) * osize + 2 * Cout * 8 * 4
    tw2 = _pick_lane_tile(w_pad, _VMEM_BUDGET, per_lane2, cap=512)
    fixed2 = 2 * Cout * 8 * tw2 * 4                         # hf (1-row) buffers
    per_row2 = 2 * Cout * tw2 * osize + 2 * Cout * 128 * 4  # out + lane-padded vf
    th = _pick_sublane_tile(H, _VMEM_BUDGET - fixed2, per_row2, mult_h)
    est2 = fixed2 + per_row2 * _round_up(th, mult_h) + (2 << 20)
    vmem2 = int(min(max(est2 * 3 // 2, 16 << 20), 40 << 20))

    out = pl.pallas_call(
        _broadcast_add_kernel,
        out_shape=jax.ShapeDtypeStruct((N, Cout, H, w_pad), out_dtype),
        grid_spec=pltpu.PrefetchScalarGridSpec(
            num_scalar_prefetch=0,
            grid=(N, H // th, w_pad // tw2),
            in_specs=[
                pl.BlockSpec((1, Cout, 1, tw2), lambda n, hi, wi: (n, 0, 0, wi)),
                pl.BlockSpec((1, Cout, th, 1), lambda n, hi, wi: (n, 0, hi, 0)),
            ],
            out_specs=pl.BlockSpec((1, Cout, th, tw2),
                                   lambda n, hi, wi: (n, 0, hi, wi)),
        ),
        compiler_params=pltpu.CompilerParams(
            dimension_semantics=("parallel", "parallel", "parallel"),
            vmem_limit_bytes=vmem2),
    )(hf4, vf4)

    if w_pad != W:
        out = out[..., :W]
    return out


if __name__ == "__main__":
    # Small shapes consistent with ERPPooling(in_channels=4, out_channels=8).
    N, Cin, Cout, H, W = 2, 4, 8, 16, 16

    key = jax.random.PRNGKey(0)
    kx, kwh, kwv = jax.random.split(key, 3)

    x = jax.random.normal(kx, (N, Cin, H, W), dtype=jnp.float32)

    # Horizontal branch: Conv2d(Cin, Cout, 1, bias=False) + BatchNorm2d (eval).
    wh = 0.1 * jax.random.normal(kwh, (Cout, Cin), dtype=jnp.float32)
    gh = 1.0 + 0.10 * jnp.arange(Cout, dtype=jnp.float32)
    bh = 0.05 * jnp.arange(Cout, dtype=jnp.float32)
    rmh = 0.01 * jnp.arange(Cout, dtype=jnp.float32)
    rvh = 1.0 + 0.02 * jnp.arange(Cout, dtype=jnp.float32)

    # Vertical branch parameters.
    wv = 0.1 * jax.random.normal(kwv, (Cout, Cin), dtype=jnp.float32)
    gv = 1.0 - 0.05 * jnp.arange(Cout, dtype=jnp.float32)
    bv = -0.03 * jnp.arange(Cout, dtype=jnp.float32)
    rmv = -0.02 * jnp.arange(Cout, dtype=jnp.float32)
    rvv = 1.0 + 0.03 * jnp.arange(Cout, dtype=jnp.float32)

    hp = (wh, gh, bh, rmh, rvh)
    vp = (wv, gv, bv, rmv, rvv)

    out = erp_pooling_forward(x, hp, vp)
    out = jax.block_until_ready(out)

    # Pure-JAX reference for the full ERPPooling forward (eval mode).
    eps = 1e-5

    def branch(v, w, g, b, rm, rv):
        z = jnp.einsum("nchw,oc->nohw", v, w)
        z = (z - rm[None, :, None, None]) / jnp.sqrt(rv[None, :, None, None] + eps)
        z = z * g[None, :, None, None] + b[None, :, None, None]
        return jnp.maximum(z, 0.0)  # ReLU

    vec_h = jnp.mean(x, axis=2, keepdims=True)   # (N, Cin, 1, W)
    vec_v = jnp.mean(x, axis=3, keepdims=True)   # (N, Cin, H, 1)
    ref = (branch(vec_h, wh, gh, bh, rmh, rvh)
           + branch(vec_v, wv, gv, bv, rmv, rvv))

    assert out.shape == (N, Cout, H, W)
    assert jnp.max(jnp.abs(out - ref)) < 1e-4

    # bf16 I/O path (accumulates in f32 in-kernel, casts only at the store).
    out_bf16 = erp_pooling_forward(x.astype(jnp.bfloat16), hp, vp)
    out_bf16 = jax.block_until_ready(out_bf16)
    assert out_bf16.dtype == jnp.bfloat16
    assert jnp.max(jnp.abs(out_bf16.astype(jnp.float32) - ref)) < 5e-2

    print("KERNEL_OK")
</pallas_src>

<mosaic_0001>
module attributes {stable_mosaic.version = 11 : i64} {
  func.func @_pool_project_kernel(%arg0: i32, %arg1: i32, %arg2: memref<1x4x16x128xf32, #tpu.memory_space<vmem>>, %arg3: memref<8x64xf32, #tpu.memory_space<vmem>>, %arg4: memref<8x1xf32, #tpu.memory_space<vmem>>, %arg5: memref<8x4xf32, #tpu.memory_space<vmem>>, %arg6: memref<8x1xf32, #tpu.memory_space<vmem>>, %arg7: memref<1x8x128xf32, #tpu.memory_space<vmem>>, %arg8: memref<1x8x16xf32, #tpu.memory_space<vmem>>, %arg9: memref<4x16x128xf32, #tpu.memory_space<vmem>>) attributes {dimension_semantics = [#tpu.dimension_semantics<parallel>, #tpu.dimension_semantics<arbitrary>], iteration_bounds = array<i64: 2, 1>, scalar_prefetch = 0 : i64, scratch_operands = 1 : i64, tpu.core_type = #tpu.core_type<tc>, window_params = [{transform_indices = @transform_0, window_bounds = array<i64: 1, 4, 16, 128>}, {pipeline_mode = #tpu.pipeline_mode<synchronous>, transform_indices = @transform_1, window_bounds = array<i64: 8, 64>}, {pipeline_mode = #tpu.pipeline_mode<synchronous>, transform_indices = @transform_2, window_bounds = array<i64: 8, 1>}, {pipeline_mode = #tpu.pipeline_mode<synchronous>, transform_indices = @transform_3, window_bounds = array<i64: 8, 4>}, {pipeline_mode = #tpu.pipeline_mode<synchronous>, transform_indices = @transform_4, window_bounds = array<i64: 8, 1>}, {transform_indices = @transform_5, window_bounds = array<i64: 1, 8, 128>}, {transform_indices = @transform_6, window_bounds = array<i64: 1, 8, 16>}]} {
    %c0 = arith.constant 0 : index
    %c0_0 = arith.constant 0 : index
    %c0_1 = arith.constant 0 : index
    %c0_2 = arith.constant 0 : index
    %0 = vector.load %arg2[%c0, %c0_0, %c0_1, %c0_2] : memref<1x4x16x128xf32, #tpu.memory_space<vmem>>, vector<1x4x16x128xf32>
    %1 = vector.shape_cast %0 : vector<1x4x16x128xf32> to vector<4x16x128xf32>
    %c0_3 = arith.constant 0 : index
    %c0_4 = arith.constant 0 : index
    %2 = vector.load %arg3[%c0_3, %c0_4] : memref<8x64xf32, #tpu.memory_space<vmem>>, vector<8x64xf32>
    %3 = vector.shape_cast %1 : vector<4x16x128xf32> to vector<64x128xf32>
    %cst = arith.constant dense<0.000000e+00> : vector<8x128xf32>
    %4 = tpu.matmul %2, %3, %cst {dimension_numbers = #tpu.dot_dimension_numbers<[1], [0], [0], [1], [0, 0, 1, 1], [], []>} : vector<8x64xf32>, vector<64x128xf32>, vector<8x128xf32> -> vector<8x128xf32>
    %c0_5 = arith.constant 0 : index
    %c0_6 = arith.constant 0 : index
    %5 = vector.load %arg4[%c0_5, %c0_6] : memref<8x1xf32, #tpu.memory_space<vmem>>, vector<8x1xf32>
    %6 = vector.broadcast %5 : vector<8x1xf32> to vector<8x128xf32>
    %7 = arith.addf %4, %6 : vector<8x128xf32>
    %cst_7 = arith.constant 0.000000e+00 : f32
    %8 = vector.broadcast %cst_7 : f32 to vector<8x128xf32>
    %9 = arith.maximumf %7, %8 : vector<8x128xf32>
    %c0_8 = arith.constant 0 : index
    %c0_9 = arith.constant 0 : index
    %c0_10 = arith.constant 0 : index
    %10 = vector.load %arg7[%c0_8, %c0_9, %c0_10] : memref<1x8x128xf32, #tpu.memory_space<vmem>>, vector<1x8x128xf32>
    %11 = vector.shape_cast %10 : vector<1x8x128xf32> to vector<8x128xf32>
    %12 = vector.shape_cast %9 : vector<8x128xf32> to vector<1x8x128xf32>
    tpu.vector_store %arg7[%c0_8, %c0_9, %c0_10], %12 {strides = array<i32>} : memref<1x8x128xf32, #tpu.memory_space<vmem>>, vector<1x8x128xf32>,
    %c0_i32 = arith.constant 0 : i32
    %13 = arith.cmpi eq, %arg1, %c0_i32 : i32
    %14 = arith.extui %13 : i1 to i32
    %c0_i32_11 = arith.constant 0 : i32
    %15 = arith.cmpi ne, %14, %c0_i32_11 : i32
    scf.if %15 {
      %cst_20 = arith.constant 0.000000e+00 : f32
      %22 = vector.broadcast %cst_20 : f32 to vector<4x16x128xf32>
      %c0_21 = arith.constant 0 : index
      %c0_22 = arith.constant 0 : index
      %c0_23 = arith.constant 0 : index
      %23 = vector.load %arg9[%c0_21, %c0_22, %c0_23] : memref<4x16x128xf32, #tpu.memory_space<vmem>>, vector<4x16x128xf32>
      tpu.vector_store %arg9[%c0_21, %c0_22, %c0_23], %22 {strides = array<i32>} : memref<4x16x128xf32, #tpu.memory_space<vmem>>, vector<4x16x128xf32>,
    } else {
    }
    %c0_12 = arith.constant 0 : index
    %c0_13 = arith.constant 0 : index
    %c0_14 = arith.constant 0 : index
    %16 = vector.load %arg9[%c0_12, %c0_13, %c0_14] : memref<4x16x128xf32, #tpu.memory_space<vmem>>, vector<4x16x128xf32>
    %17 = arith.addf %16, %1 : vector<4x16x128xf32>
    %c0_15 = arith.constant 0 : index
    %c0_16 = arith.constant 0 : index
    %c0_17 = arith.constant 0 : index
    %18 = vector.load %arg9[%c0_15, %c0_16, %c0_17] : memref<4x16x128xf32, #tpu.memory_space<vmem>>, vector<4x16x128xf32>
    tpu.vector_store %arg9[%c0_15, %c0_16, %c0_17], %17 {strides = array<i32>} : memref<4x16x128xf32, #tpu.memory_space<vmem>>, vector<4x16x128xf32>,
    %c0_i32_18 = arith.constant 0 : i32
    %19 = arith.cmpi eq, %arg1, %c0_i32_18 : i32
    %20 = arith.extui %19 : i1 to i32
    %c0_i32_19 = arith.constant 0 : i32
    %21 = arith.cmpi ne, %20, %c0_i32_19 : i32
    scf.if %21 {
      %c0_20 = arith.constant 0 : index
      %c0_21 = arith.constant 0 : index
      %c0_22 = arith.constant 0 : index
      %22 = vector.load %arg9[%c0_20, %c0_21, %c0_22] : memref<4x16x128xf32, #tpu.memory_space<vmem>>, vector<4x16x128xf32>
      %cst_23 = arith.constant dense<0.000000e+00> : vector<4x16xf32>
      %23 = vector.multi_reduction <add>, %22, %cst_23 [2] : vector<4x16x128xf32> to vector<4x16xf32>
      %c0_24 = arith.constant 0 : index
      %c0_25 = arith.constant 0 : index
      %24 = vector.load %arg5[%c0_24, %c0_25] : memref<8x4xf32, #tpu.memory_space<vmem>>, vector<8x4xf32>
      %cst_26 = arith.constant dense<0.000000e+00> : vector<8x16xf32>
      %25 = tpu.matmul %24, %23, %cst_26 {dimension_numbers = #tpu.dot_dimension_numbers<[1], [0], [0], [1], [0, 0, 1, 1], [], []>} : vector<8x4xf32>, vector<4x16xf32>, vector<8x16xf32> -> vector<8x16xf32>
      %c0_27 = arith.constant 0 : index
      %c0_28 = arith.constant 0 : index
      %26 = vector.load %arg6[%c0_27, %c0_28] : memref<8x1xf32, #tpu.memory_space<vmem>>, vector<8x1xf32>
      %27 = vector.broadcast %26 : vector<8x1xf32> to vector<8x16xf32>
      %28 = arith.addf %25, %27 : vector<8x16xf32>
      %cst_29 = arith.constant 0.000000e+00 : f32
      %29 = vector.broadcast %cst_29 : f32 to vector<8x16xf32>
      %30 = arith.maximumf %28, %29 : vector<8x16xf32>
      %c0_30 = arith.constant 0 : index
      %c0_31 = arith.constant 0 : index
      %c0_32 = arith.constant 0 : index
      %31 = vector.load %arg8[%c0_30, %c0_31, %c0_32] : memref<1x8x16xf32, #tpu.memory_space<vmem>>, vector<1x8x16xf32>
      %32 = vector.shape_cast %31 : vector<1x8x16xf32> to vector<8x16xf32>
      %33 = vector.shape_cast %30 : vector<8x16xf32> to vector<1x8x16xf32>
      tpu.vector_store %arg8[%c0_30, %c0_31, %c0_32], %33 {strides = array<i32>} : memref<1x8x16xf32, #tpu.memory_space<vmem>>, vector<1x8x16xf32>,
    } else {
    }
    return
  }
  func.func @transform_0(%arg0: i32, %arg1: i32) -> (i32, i32, i32, i32) {
    %c0_i32 = arith.constant 0 : i32
    %c0_i32_0 = arith.constant 0 : i32
    %c0_i32_1 = arith.constant 0 : i32
    return %arg0, %c0_i32, %c0_i32_0, %arg1 : i32, i32, i32, i32
  }
  func.func @transform_1(%arg0: i32, %arg1: i32) -> (i32, i32) {
    %c0_i32 = arith.constant 0 : i32
    %c0_i32_0 = arith.constant 0 : i32
    %c0_i32_1 = arith.constant 0 : i32
    return %c0_i32, %c0_i32_0 : i32, i32
  }
  func.func @transform_2(%arg0: i32, %arg1: i32) -> (i32, i32) {
    %c0_i32 = arith.constant 0 : i32
    %c0_i32_0 = arith.constant 0 : i32
    %c0_i32_1 = arith.constant 0 : i32
    return %c0_i32, %c0_i32_0 : i32, i32
  }
  func.func @transform_3(%arg0: i32, %arg1: i32) -> (i32, i32) {
    %c0_i32 = arith.constant 0 : i32
    %c0_i32_0 = arith.constant 0 : i32
    %c0_i32_1 = arith.constant 0 : i32
    return %c0_i32, %c0_i32_0 : i32, i32
  }
  func.func @transform_4(%arg0: i32, %arg1: i32) -> (i32, i32) {
    %c0_i32 = arith.constant 0 : i32
    %c0_i32_0 = arith.constant 0 : i32
    %c0_i32_1 = arith.constant 0 : i32
    return %c0_i32, %c0_i32_0 : i32, i32
  }
  func.func @transform_5(%arg0: i32, %arg1: i32) -> (i32, i32, i32) {
    %c0_i32 = arith.constant 0 : i32
    %c0_i32_0 = arith.constant 0 : i32
    return %arg0, %c0_i32, %arg1 : i32, i32, i32
  }
  func.func @transform_6(%arg0: i32, %arg1: i32) -> (i32, i32, i32) {
    %c0_i32 = arith.constant 0 : i32
    %c0_i32_0 = arith.constant 0 : i32
    %c0_i32_1 = arith.constant 0 : i32
    return %arg0, %c0_i32, %c0_i32_0 : i32, i32, i32
  }
}

</mosaic_0001>

<bundles_post_ra>
// kernel: tpu_custom_call.1
= control target key start
LH: loop header
LB: loop body
LE: loop exit
PB: predicated region body
PF: predicated region fallthrough
CT: control target
= control target key end

     0   :  { %s1049_s0 = inlined_call_operand.hbm [shape: f32[2,4,16,128], index: 0, kind: input, shape index: {}]   ;;  %s1050_s1 = inlined_call_operand.vmem [shape: f32[8,64], index: 1, kind: input, shape index: {}]   ;;  %s1051_s2 = inlined_call_operand.vmem [shape: f32[8,1], index: 2, kind: input, shape index: {}]   ;;  %s1052_s3 = inlined_call_operand.vmem [shape: f32[8,4], index: 3, kind: input, shape index: {}]   ;;  %s1053_s4 = inlined_call_operand.vmem [shape: f32[8,1], index: 4, kind: input, shape index: {}]   ;;  %s1054_s5 = inlined_call_operand.hbm [shape: f32[2,8,128], index: 5, kind: output, shape index: {0}]   ;;  %s1055_s6 = inlined_call_operand.hbm [shape: f32[2,8,16], index: 6, kind: output, shape index: {1}]  }
   0x1   :  { %1057 = sst [smem:[#allocation13_spill]] %s1049_s0 }
   0x2   :  { %12 = vsyncpa [#allocation4], 0 }
   0x3   :  { %14 = vsyncpa [#allocation4 + $0x1], 0 }
   0x4   :  { %15 = vsyncpa [#allocation5], 0 }
   0x5   :  { %17 = vsyncpa [#allocation5 + $0x1], 0 }
   0x6   :  { %18 = vsyncpa [#allocation8], 0 }
   0x7   :  { %20 = vsyncpa [#allocation8 + $0x1], 0  ;;  %s898_s21 = smov 0   ;;  %s900_s22 = smov 0  }
   0x8   :  { %s902_s23 = smov 0   ;;  %s904_s24 = smov 0  }
   0x9   :  { %s906_s25 = smov 0   ;;  %s908_s26 = smov 0  }
   0xa LB: > { %s621_s27 = sadd.s32 4294967295, %s858_s26   ;;  %s622_s28 = sadd.s32 4294967294, %s858_s26   ;;  %s858_s26 = sphi %s908_s26, %s26_s26   ;;  %s854_s25 = sphi %s906_s25, %s1069_s25   ;;  %s850_s24 = sphi %s904_s24, %s1068_s24   ;;  %s846_s23 = sphi %s902_s23, %s1067_s23   ;;  %s842_s22 = sphi %s900_s22, %s1066_s22   ;;  %s838_s21 = sphi %s898_s21, %s1065_s21  }
   0xb   : > { %s38_s29 = sadd.s32 1, %s854_s25  ;;  %s47_s30 = sadd.s32 1, %s846_s23 }
   0xc   : > { %p40_p0 = scmp.ge.s32.totalorder %s38_s29, 2  ;;  %p54_p1 = scmp.ne.s32.totalorder %s846_s23, %s842_s22 }
   0xd   : > { %p55_p2 = scmp.eq.s32.totalorder %s858_s26, 0  ;;  %p60_p3 = scmp.ne.s32.totalorder %s842_s22, %s838_s21 }
   0xe   : > { %s1071_s29 = smov (%p40_p0, %s38_s29), 0  ;;  %p61_p5 = scmp.eq.s32.totalorder %s621_s27, 0 }
   0xf   : > { %1058 = sst [smem:[#allocation12_spill]] %s1071_s29  ;;  %p939_p4 = por %p55_p2, %p54_p1 }
  0x10   : > { %s42_s8 = ssub.s32 %s854_s25, %s1071_s29  ;;  %p170_p6 = scmp.eq.s32.totalorder %s621_s27, 1 }
  0x11   : > { %p45_p7 = scmp.eq.s32.totalorder %s42_s8, 0  ;;  %p945_p8 = por %p61_p5, %p60_p3 }
  0x12   : > { %p949_p9 = por %p170_p6, %p54_p1  ;;  %p176_p10 = scmp.eq.s32.totalorder %s622_s28, 1 }
  0x13   : > { %s954_s11 = scalar_select %p45_p7, %s846_s23, %s47_s30  }
  0x14   : > { %p956_p11 = por %p176_p10, %p60_p3  ;;  %p624_p12 = scmp.ge.s32.totalorder %s858_s26, 2 }
  0x15   : > { %p659_p13 = scmp.lt.s32.totalorder %s858_s26, 2  ;;  %s234_s13 = sand.u32 1, %s846_s23  }
  0x16   : > { %s625_s14 = sshll.u32 %s234_s13, 6  ;;  %s641_s15 = sshll.u32 %s854_s25, 6 }
  0x17   : > { %s1063_s0 = sld [smem:[#allocation13_spill]]  ;;  %s238_s19 = scalar_lea.vmem [#allocation3], %s625_s14 }
  0x18   : > { %s247_s20 = sshll.u32 %s238_s19, 4  ;;  %p649_p0 = pnand %p659_p13, %p939_p4  ;;  %s248_s20 = int_to_ptr.vmem [resolvable:$true] %s247_s20 }
  0x19   : > { %p628_p1 = scmp.ge.s32.totalorder %s858_s26, 1  ;;  %s235_s28 = scalar_lea.sflag [#allocation4], %s234_s13 }
  0x1a   : > { %s860_s30 = smov 128   ;;  %s861_s8 = smov 8  }
  0x1b   : > { %p255_p2 = scmp.lt.s32.totalorder %s858_s26, 3 }
  0x1d   : > { %s244_s18 = scalar_lea.hbm %s1063_s0, %s641_s15  ;;  %p256_p3 = pnand %p628_p1, %p255_p2 }
  0x1e   : > { %s245_s27 = sshll.u32 %s244_s18, 4  ;;  %s972_s29 = sand.u32 (!%p256_p3), 1, %s842_s22   ;;  %s246_s27 = int_to_ptr.hbm [resolvable:$true] %s245_s27 }
  0x1f   : > { %651 = dma.hbm_to_vmem [thread:$0]  (!%p649_p0), %s246_s27, 1024, %s248_s20, %s235_s28, %s860_s30, %s860_s30, %s861_s8  }
  0x20   : > { %259 = sbr.rel (%p256_p3) target bundleno = 310 (0x136), region = 40  ;;  %s629_s14 = sshll.u32 (!%p256_p3), %s972_s29, 6 }
  0x21   : > { %s262_s15 = scalar_lea.sflag (!%p256_p3), [#allocation4], %s972_s29  ;;  %s265_s16 = scalar_lea.vmem (!%p256_p3), [#allocation3], %s629_s14 }
  0x25   : > { %825 = dma.done.wait (%p945_p8), %s262_s15, 1024  }
  0x26   : > { %827 = vsyncadd (%p945_p8), %s262_s15, 4294966272  ;;  %v304_v0 = vld [vmem:[%s265_s16 + $0x20] sm:$0xff]  ;;  %v302_v1 = vld [vmem:[%s265_s16 + $0x10] sm:$0xff]  ;;  %vm315_vm0 = vcmask 523264   ;;  %v862_v11 = vmov 0   ;;  %v419_v12 = vlaneseq  ;;  %vm424_vm1 = vcmask 130112  }
  0x27   : > { %v300_v2 = vld [vmem:[%s265_s16] sm:$0xff]  ;;  %396 = vadd.xlane.f32.xlu2 %v304_v0  ;;  %392 = vadd.xlane.f32.xlu1 %v302_v1  ;;  %v307_v3 = vld [vmem:[%s265_s16 + $0x38] sm:$0xff]  ;;  %v306_v4 = vld [vmem:[%s265_s16 + $0x30] sm:$0xff]  ;;  %vm435_vm2 = vcmask 1041409   ;;  %vm437_vm3 = vcmask 1042434   ;;  %vm439_vm4 = vcmask 1043459  }
  0x28   : > { %388 = vadd.xlane.f32.xlu0 %v300_v2  ;;  %327 = vmatpush.msra.mxu0 %v307_v3  ;;  %v305_v5 = vld [vmem:[%s265_s16 + $0x28] sm:$0xff]  ;;  %v303_v6 = vld [vmem:[%s265_s16 + $0x18] sm:$0xff]  ;;  %v308_v8 = vld [vmem:[%s1050_s1] sm:$0xff]  ;;  %v420_v16 = vand.u32 127, %v419_v12  ;;  %vm445_vm5 = vcmask 1043456   ;;  %vm441_vm6 = vcmask 31744  }
  0x29   : > { %v301_v7 = vld [vmem:[%s265_s16 + $0x8] sm:$0xff]  ;;  %v405_v9 = vld [vmem:[%s1053_s4] sm:$0xff]  ;;  %713 = vset.pattern.permute.xlu0 %v862_v11  ;;  %712 = vset.pattern.permute.xlu2 %v862_v11  ;;  %s630_s28 = sshll.u32 %s972_s29, 3  ;;  %s637_s30 = sshll.u32 %s850_s24, 3 }
  0x2a   : > { %328 = vmatpush.msra.mxu0 %v306_v4  ;;  %v309_v10 = vld [vmem:[%s1051_s2] sm:$0xff]  ;;  %v422_v17 = vadd.s32 4294967288, %v420_v16  ;;  %s488_s15 = scalar_lea.hbm %s1054_s5, %s637_s30  ;;  %s292_s16 = scalar_lea.vmem [#allocation6], %s630_s28 }
  0x2b   : > { %v404_v37 = vld [vmem:[%s1052_s3] sm:$0xff]  ;;  %s490_s7 = sshll.u32 %s292_s16, 4  ;;  %s492_s9 = sshll.u32 %s488_s15, 4  ;;  %s491_s7 = int_to_ptr.vmem [resolvable:$true] %s490_s7  ;;  %s493_s9 = int_to_ptr.hbm [resolvable:$true] %s492_s9 }
  0x2c   : > { %329 = vmatpush.msra.mxu0 %v305_v5  ;;  %s472_s13 = scalar_lea.sflag [#allocation5], %s972_s29  ;;  %s758_s17 = sshra.s32 %s493_s9, 4  ;;  %s759_s17 = int_to_ptr.hbm [resolvable:$true] %s758_s17 }
  0x2d   : > { %s760_s18 = scalar_lea.hbm %s759_s17, 8  ;;  %s764_s20 = scalar_lea.hbm %s1054_s5, 16 }
  0x2e   : > { %330 = vmatpush.msra.mxu0 %v304_v0  ;;  %p761_p4 = scmp.ne.s32.totalorder %s759_s17, %s760_s18  ;;  %p765_p7 = scmp.lt.s32.totalorder %s759_s17, %s1054_s5 }
  0x2f   : > { %398 = vadd.xlane.f32.xlu2 %v305_v5  ;;  %394 = vadd.xlane.f32.xlu1 %v303_v6  ;;  %p766_p8 = scmp.lt.s32.totalorder %s764_s20, %s760_s18 }
  0x30   : > { %390 = vadd.xlane.f32.xlu0 %v301_v7  ;;  %331 = vmatpush.msra.mxu0 %v303_v6  ;;  %p762_p5 = pnand %p761_p4, %p949_p9 }
  0x31   : > { %p767_p10 = por %p766_p8, %p765_p7 }
  0x32   : > { %332 = vmatpush.msra.mxu0 %v302_v1  ;;  %p763_p6 = pneg %p762_p5 }
  0x34   : > { %333 = vmatpush.msra.mxu0 %v301_v7  ;;  %p768_p13 = pnand %p767_p10, %p763_p6 }
  0x36   : > { %334 = vmatpush.msra.mxu0 %v300_v2 }
  0x37   : > { %402 = vadd.xlane.f32.xlu1 %v307_v3  ;;  %632 = vmatmul.msk.f32.vlgmr.msra.gmra.mxu0 %vm315_vm0, %v308_v8 }
  0x38   : > { %400 = vadd.xlane.f32.xlu0 %v306_v4 }
  0x47   : > { %312 = vperm.xlu2 %712, %v309_v10  }
  0x4c   : > { %408 = vperm.xlu0 %713, %v405_v9  }
  0x9a   : > { %v397_v13 = vpop.xlane.xlu2 %396  ;;  %v393_v14 = vpop.xlane.xlu1 %392 }
  0x9b   : > { %v389_v15 = vpop.xlane.xlu0 %388  ;;  %v426_v23 = vperm.slane %v393_v14, %v420_v16  ;;  %v429_v25 = vperm.slane %v397_v13, %v420_v16 }
  0x9c   : > { %v421_v24 = vperm.slane %v389_v15, %v420_v16 }
  0xa2   : > { %v395_v18 = vpop.xlane.xlu1 %394  ;;  %v399_v20 = vpop.xlane.xlu2 %398 }
  0xa3   : > { %v391_v19 = vpop.xlane.xlu0 %390  ;;  %v427_v21 = vperm.slane %v395_v18, %v422_v17  ;;  %v430_v26 = vperm.slane %v399_v20, %v422_v17 }
  0xa4   : > { %v423_v22 = vperm.slane %v391_v19, %v422_v17 }
  0xa5   : > { %v428_v27 = vsel %vm424_vm1, %v427_v21, %v426_v23  ;;  %v431_v32 = vsel %vm424_vm1, %v430_v26, %v429_v25 }
  0xa6   : > { %v425_v28 = vsel %vm424_vm1, %v423_v22, %v421_v24 }
  0xa7   : > { %v436_v33 = vsel %vm435_vm2, %v428_v27, %v425_v28 }
  0xa8   : > { %v438_v36 = vsel %vm437_vm3, %v431_v32, %v436_v33 }
  0xaa   : > { %v403_v29 = vpop.xlane.xlu1 %402  ;;  %v313_v39 = vpop.permute.xlu2 %312 }
  0xab   : > { %v433_v30 = vperm.slane %v403_v29, %v422_v17  ;;  %v401_v31 = vpop.xlane.xlu0 %400 }
  0xac   : > { %v432_v34 = vperm.slane %v401_v31, %v420_v16 }
  0xae   : > { %v434_v35 = vsel %vm424_vm1, %v433_v30, %v432_v34 }
  0xaf   : > { %v440_v38 = vsel %vm439_vm4, %v434_v35, %v438_v36 }
  0xb0   : > { %633 = vmatpush.msk.msra.mxu1 %vm445_vm5, %v440_v38 }
  0xb1   : > { %634 = vmatmul.msk.f32.vlgmr.msra.gmra.mxu1 %vm441_vm6, %v404_v37 }
  0xb4   : > { %v336_v40 = vpop.f32.mrf.mxu0 }
  0xb5   : > { %v337_v41 = vadd.f32 %v336_v40, %v313_v39 }
  0xb7   : > { %v339_v42 = vmax.f32 %v337_v41, 0.0 }
  0xb9   : > { %340 = vst [vmem:[%s292_s16] sm:$0xff] %v339_v42 }
  0xba   : > { %771 = shalt.err (!%p768_p13)
}
  0xbb   : > { %644 = dma.vmem_to_hbm [thread:$0]  (%p949_p9), %s491_s7, 128, %s493_s9, %s472_s13   ;;  %vm469_vm7 = vcmask 130048  }
  0xbc   : > { %s502_s16 = scalar_lea.hbm %s1055_s6, %s637_s30  ;;  %s299_s24 = scalar_lea.vmem [#allocation7], %s630_s28 }
  0xbd   : > { %s504_s19 = sshll.u32 %s299_s24, 4  ;;  %s506_s0 = sshll.u32 %s502_s16, 4  ;;  %s505_s19 = int_to_ptr.vmem [resolvable:$true] %s504_s19  ;;  %s507_s0 = int_to_ptr.hbm [resolvable:$true] %s506_s0 }
  0xbe   : > { %v409_v43 = vpop.permute.xlu0 %408  ;;  %s477_s17 = scalar_lea.sflag [#allocation8], %s972_s29  ;;  %s786_s18 = sshra.s32 %s507_s0, 4  ;;  %s787_s18 = int_to_ptr.hbm [resolvable:$true] %s786_s18 }
  0xbf   : > { %s788_s7 = scalar_lea.hbm %s787_s18, 8  ;;  %s792_s28 = scalar_lea.hbm %s1055_s6, 16 }
  0xc0   : > { %p789_p0 = scmp.ne.s32.totalorder %s787_s18, %s788_s7  ;;  %p793_p3 = scmp.lt.s32.totalorder %s787_s18, %s1055_s6 }
  0xc1   : > { %p794_p4 = scmp.lt.s32.totalorder %s792_s28, %s788_s7 }
  0xc2   : > { %p790_p1 = pnand %p789_p0, %p949_p9 }
  0xc3   : > { %p795_p5 = por %p794_p4, %p793_p3 }
  0xc4   : > { %p791_p2 = pneg %p790_p1 }
  0xc6   : > { %p796_p6 = pnand %p795_p5, %p791_p2 }
 0x12e   : > { %v465_v44 = vpop.f32.mrf.mxu1 }
 0x12f   : > { %v466_v45 = vadd.f32 %v465_v44, %v409_v43 }
 0x131   : > { %v468_v46 = vmax.f32 %v466_v45, 0.0 }
 0x133   : > { %470 = vst.msk [vmem:[%s299_s24] sm:$0xff] %vm469_vm7, %v468_v46 }
 0x134   : > { %799 = shalt.err (!%p796_p6)
}
 0x135   : > { %645 = dma.vmem_to_hbm [thread:$0]  (%p949_p9), %s505_s19, 128, %s507_s0, %s477_s17  }
 0x136 PF: > { %s518_s29 = sand.u32 1, %s838_s21   ;;  %p653_p7 = pnand %p624_p12, %p956_p11 }
 0x137   : > { %s519_s27 = scalar_lea.sflag [#allocation5], %s518_s29 }
 0x138   : > { %p654_p8 = pneg %p653_p7 }
 0x13a   : > { %829 = dma.done.wait (%p654_p8), %s519_s27, 128  }
 0x13b   : > { %831 = vsyncadd (%p654_p8), %s519_s27, 4294967168  ;;  %s529_s8 = scalar_lea.sflag [#allocation8], %s518_s29 }
 0x13c   : > { %833 = dma.done.wait (%p654_p8), %s529_s8, 128  }
 0x13d   : > { %835 = vsyncadd (%p654_p8), %s529_s8, 4294967168  ;;  %s26_s26 = sadd.s32 1, %s858_s26   ;;  %s1064_s0 = sld [smem:[#allocation12_spill]] }
 0x13e   : > { %p23_p10 = scmp.ge.s32.totalorder %s26_s26, 4   ;;  %s1065_s21 = smov %s842_s22 }
 0x13f   : > { %s1066_s22 = smov %s846_s23  ;;  %s1067_s23 = smov %s954_s11 }
 0x140   : > { %s1068_s24 = smov %s854_s25  ;;  %25 = sbr.rel (!%p23_p10) target bundleno = 10 (0xa), region = 110 }
 0x143   : > { %s1069_s25 = smov %s1064_s0 }
 0x145   :  { %535 = vsyncpa [#allocation4], 1 }
 0x146   :  { %537 = vsyncpa [#allocation4 + $0x1], 1 }
 0x147   :  { %538 = vsyncpa [#allocation5], 1 }
 0x148   :  { %540 = vsyncpa [#allocation5 + $0x1], 1 }
 0x149   :  { %541 = vsyncpa [#allocation8], 1 }
 0x14a   :  { %543 = vsyncpa [#allocation8 + $0x1], 1 }

</bundles_post_ra>
